<compile_context>
chip_gen: v5e
topology: v5e:2x2
jax: 0.10.0
libtpu: 0.0.40
codegen_flags: <defaults>
</compile_context>

<pallas_src>
import functools

import jax
import jax.numpy as jnp
from jax.experimental import pallas as pl
from jax.experimental.pallas import tpu as pltpu


def _attention_head_kernel(x_ref, w_ref, o_ref, k_scr, q_scr, v_scr, *,
                           batch_block, seq_len, head_size, compute_dtype):
    """One grid step == one block of `batch_block` batch elements.

    x_ref : (Bb*S, E)  VMEM, input dtype (batch packed into the matmul M dim)
    w_ref : (3, E, H)  VMEM, compute dtype, stacked [K, Q*scale, V] weights
    o_ref : (Bb*S, H)  VMEM, input dtype
    k/q/v_scr : (Bb*S, H) f32 VMEM scratch (projections live in VMEM, not in
                vregs, so realistic Bb*S does not spill).
    """
    Bb, S, H = batch_block, seq_len, head_size

    # Load x once and cast to the MXU compute dtype in-kernel: the HBM/VMEM
    # block keeps the input dtype's sublane tiling (8 for f32), so Bb*S only
    # needs 8-row alignment even when computing in bf16 (min sublane tile 16).
    x = x_ref[...].astype(compute_dtype)                      # (Bb*S, E)

    # Three N=H projections sharing the single x load (lane-aligned full
    # blocks; a packed [E, 3H] layout is only lane-aligned when H % 128 == 0).
    k_scr[...] = jnp.dot(x, w_ref[0].astype(compute_dtype),
                         preferred_element_type=jnp.float32)
    q_scr[...] = jnp.dot(x, w_ref[1].astype(compute_dtype),
                         preferred_element_type=jnp.float32)
    v_scr[...] = jnp.dot(x, w_ref[2].astype(compute_dtype),
                         preferred_element_type=jnp.float32)

    # Causal mask built ONCE (hoisted: JAX does not CSE broadcast_in_dim, an
    # in-loop mask would be replicated Bb times).
    row_id = jax.lax.broadcasted_iota(jnp.int32, (S, S), 0)
    col_id = jax.lax.broadcasted_iota(jnp.int32, (S, S), 1)
    causal = col_id <= row_id

    # Per-batch-element attention. Bb is small and static -> unrolled.
    # TODO(synk): for non-toy S, replace the whole-S (S,S) score matrix with a
    #             flash-style KV-tiled online-softmax loop with causal tile
    #             skipping (the (S,S) f32 scores are the first VMEM blow-up).
    for b in range(Bb):
        r0 = b * S
        k = k_scr[r0:r0 + S, :]                   # (S, H) f32 from VMEM scratch
        q = q_scr[r0:r0 + S, :]                   # 1/sqrt(H) already folded in
        v = v_scr[r0:r0 + S, :]

        # scores = q @ k^T without materializing the transpose; bf16 operands,
        # f32 accumulation on the MXU.
        scores = jax.lax.dot_general(
            q.astype(compute_dtype), k.astype(compute_dtype),
            dimension_numbers=(((1,), (1,)), ((), ())),
            preferred_element_type=jnp.float32)   # (S, S) f32

        # masked_fill(tril == 0, -inf). Safe: the causal diagonal guarantees at
        # least one unmasked score per row, so denom > 0 below.
        scores = jnp.where(causal, scores, -jnp.inf)

        # Numerically stable softmax (f32). Normalization applied AFTER the PV
        # matmul: S*H multiplies instead of S*S.
        m = jnp.max(scores, axis=-1, keepdims=True)
        p = jnp.exp(scores - m)                       # unnormalized, in [0, 1]
        denom = jnp.sum(p, axis=-1, keepdims=True)    # (S, 1)

        pv = jnp.dot(p.astype(compute_dtype), v.astype(compute_dtype),
                     preferred_element_type=jnp.float32)   # (S, H) f32

        inv = pl.reciprocal(denom, approx=True)       # EUP vrcp (free slot)
        inv = inv * (2.0 - denom * inv)               # one Newton step

        # TODO(synk): output last dim H < 128 -> masked vst.msk stores; fuse
        #             all heads of a multi-head layer (n_heads*H >= 128) into
        #             one kernel to make the output lane-dense.
        o_ref[r0:r0 + S, :] = (pv * inv).astype(o_ref.dtype)


def _vmem_estimate_bytes(Bb, S, E, H, x_bytes, w_bytes):
    """Rough VMEM footprint for one grid step (double-buffered I/O blocks)."""
    rows = Bb * S
    x_blk = 2 * rows * E * x_bytes            # pipelined input block
    o_blk = 2 * rows * H * x_bytes            # pipelined output block
    w_blk = 2 * 3 * E * H * w_bytes           # weight block (worst case 2 bufs)
    scr = 3 * rows * H * 4                    # k/q/v f32 scratch
    live = 2 * S * S * 4 + rows * E * w_bytes  # scores/probs + casted x copy
    return x_blk + o_blk + w_blk + scr + live


def _pick_batch_block(B, S, E, H, x_bytes, w_bytes,
                      vmem_budget=48 * 1024 * 1024):
    """Largest Bb dividing B that (a) keeps the grid >= 2 parallel steps so
    both v7x TensorCores get work, (b) keeps block rows 8-sublane aligned, and
    (c) fits a VMEM budget conservative for v7x's 64 MiB (v5e/v6e: 128 MiB)."""
    for d in range(B, 0, -1):
        if B % d:
            continue
        if B >= 2 and d > B // 2:
            continue                           # >= 2 grid steps for v7x
        if (d * S) % 8 != 0 and d != B:
            continue
        if _vmem_estimate_bytes(d, S, E, H, x_bytes, w_bytes) <= vmem_budget:
            return d
    return 1


def attention_head(x, w_key, w_query, w_value, *, batch_block=None,
                   compute_dtype=jnp.bfloat16):
    """x: [B, S, E]; w_*: [E, H]. Returns [B, S, H] (causal attention, eval)."""
    B, S, E = x.shape
    H = w_key.shape[-1]
    compute_dtype = jnp.dtype(compute_dtype)

    # Stack weights as [3, E, H]; fold the 1/sqrt(H) score scale into the query
    # projection (zero kernel cost). Weight cast host-side (full-array block).
    scale = float(H) ** (-0.5)
    w_kqv = jnp.stack([w_key, w_query * scale, w_value]).astype(compute_dtype)

    if batch_block is None:
        batch_block = _pick_batch_block(B, S, E, H, x.dtype.itemsize,
                                        compute_dtype.itemsize)
    Bb = batch_block
    assert B % Bb == 0, "batch_block must divide batch size"
    rows = Bb * S
    assert rows % 8 == 0 or Bb == B, "block rows must be 8-sublane aligned"

    x_flat = x.reshape(B * S, E)      # pack batch into the matmul M dimension

    est = _vmem_estimate_bytes(Bb, S, E, H, x.dtype.itemsize,
                               compute_dtype.itemsize)
    vmem_limit = int(min(max(4 * est, 32 * 1024 * 1024), 48 * 1024 * 1024))

    kernel = functools.partial(
        _attention_head_kernel,
        batch_block=Bb, seq_len=S, head_size=H, compute_dtype=compute_dtype)

    def run(single_buffer_weight):
        # Weight block index never changes -> 2nd pipeline buffer is VMEM waste
        # (matters most under v7x's 64 MiB VMEM).
        if single_buffer_weight:
            w_spec = pl.BlockSpec((3, E, H), lambda i: (0, 0, 0),
                                  pipeline_mode=pl.Buffered(1))
        else:
            w_spec = pl.BlockSpec((3, E, H), lambda i: (0, 0, 0))
        return pl.pallas_call(
            kernel,
            out_shape=jax.ShapeDtypeStruct((B * S, H), x.dtype),
            grid_spec=pltpu.PrefetchScalarGridSpec(
                num_scalar_prefetch=0,
                grid=(B // Bb,),
                in_specs=[
                    pl.BlockSpec((rows, E), lambda i: (i, 0)),
                    w_spec,
                ],
                out_specs=pl.BlockSpec((rows, H), lambda i: (i, 0)),
                scratch_shapes=[pltpu.VMEM((rows, H), jnp.float32)] * 3,
            ),
            compiler_params=pltpu.CompilerParams(
                dimension_semantics=("parallel",),
                vmem_limit_bytes=vmem_limit),
        )(x_flat, w_kqv)

    try:
        out_flat = run(True)
    except Exception:  # fallback if single-buffered weight spec is rejected
        out_flat = run(False)

    return out_flat.reshape(B, S, H)


def _reference(x, w_key, w_query, w_value):
    """Pure-JAX reference matching the PyTorch forward (eval mode)."""
    k = x @ w_key
    q = x @ w_query
    v = x @ w_value
    scale = k.shape[-1] ** (-0.5)
    scores = jnp.einsum("bqh,bkh->bqk", q, k) * scale
    S = x.shape[1]
    mask = jnp.tril(jnp.ones((S, S), dtype=bool))
    scores = jnp.where(mask, scores, -jnp.inf)
    probs = jax.nn.softmax(scores, axis=-1)
    return probs @ v


if __name__ == "__main__":
    # Small config consistent with the module:
    #   BLOCK_SIZE = seq_len = 8, EMBEDDING_DIM = 32, head_size = 16, batch = 2
    B, S, E, H = 2, 8, 32, 16

    key = jax.random.PRNGKey(0)
    kx, kk, kq, kv = jax.random.split(key, 4)

    x = jax.random.normal(kx, (B, S, E), dtype=jnp.float32)
    # Deterministic "Linear(no bias)" weights; stored as [E, H] (transposed
    # from PyTorch's [H, E]).
    w_key = jax.random.normal(kk, (E, H), dtype=jnp.float32) * (E ** -0.5)
    w_query = jax.random.normal(kq, (E, H), dtype=jnp.float32) * (E ** -0.5)
    w_value = jax.random.normal(kv, (E, H), dtype=jnp.float32) * (E ** -0.5)

    ref = _reference(x, w_key, w_query, w_value)

    # Full-precision path: tight parity with the PyTorch forward semantics.
    out_f32 = attention_head(x, w_key, w_query, w_value,
                             compute_dtype=jnp.float32)
    out_f32 = jax.block_until_ready(out_f32)
    assert out_f32.shape == (B, S, H)
    assert jnp.allclose(out_f32, ref, atol=1e-4, rtol=1e-4), (
        f"f32 path max abs diff {jnp.max(jnp.abs(out_f32 - ref))}")

    # Default performance path: bf16 MXU operands, f32 accumulation/softmax.
    # Tolerance is loosened to cover bf16 operand rounding.
    out = attention_head(x, w_key, w_query, w_value)
    out = jax.block_until_ready(out)
    assert out.shape == (B, S, H)
    assert jnp.allclose(out, ref, atol=5e-2, rtol=5e-2), (
        f"bf16 path max abs diff {jnp.max(jnp.abs(out - ref))}")

    print("KERNEL_OK")
</pallas_src>

<mosaic_0001>
module attributes {stable_mosaic.version = 11 : i64} {
  func.func @_attention_head_kernel(%arg0: i32, %arg1: memref<8x32xf32, #tpu.memory_space<vmem>>, %arg2: memref<3x32x16xf32, #tpu.memory_space<vmem>>, %arg3: memref<8x16xf32, #tpu.memory_space<vmem>>, %arg4: memref<8x16xf32, #tpu.memory_space<vmem>>, %arg5: memref<8x16xf32, #tpu.memory_space<vmem>>, %arg6: memref<8x16xf32, #tpu.memory_space<vmem>>) attributes {dimension_semantics = [#tpu.dimension_semantics<parallel>], iteration_bounds = array<i64: 2>, scalar_prefetch = 0 : i64, scratch_operands = 3 : i64, tpu.core_type = #tpu.core_type<tc>, window_params = [{transform_indices = @transform_0, window_bounds = array<i64: 8, 32>}, {pipeline_mode = #tpu.pipeline_mode<synchronous>, transform_indices = @transform_1, window_bounds = array<i64: 3, 32, 16>}, {transform_indices = @transform_2, window_bounds = array<i64: 8, 16>}]} {
    %c0 = arith.constant 0 : index
    %c0_0 = arith.constant 0 : index
    %0 = vector.load %arg1[%c0, %c0_0] : memref<8x32xf32, #tpu.memory_space<vmem>>, vector<8x32xf32>
    %c0_1 = arith.constant 0 : index
    %c0_2 = arith.constant 0 : index
    %c0_3 = arith.constant 0 : index
    %1 = vector.load %arg2[%c0_1, %c0_2, %c0_3] : memref<3x32x16xf32, #tpu.memory_space<vmem>>, vector<1x32x16xf32>
    %2 = vector.shape_cast %1 : vector<1x32x16xf32> to vector<32x16xf32>
    %cst = arith.constant dense<0.000000e+00> : vector<8x16xf32>
    %3 = tpu.matmul %0, %2, %cst {dimension_numbers = #tpu.dot_dimension_numbers<[1], [0], [0], [1], [0, 0, 1, 1], [], []>} : vector<8x32xf32>, vector<32x16xf32>, vector<8x16xf32> -> vector<8x16xf32>
    %c0_4 = arith.constant 0 : index
    %c0_5 = arith.constant 0 : index
    %4 = vector.load %arg4[%c0_4, %c0_5] : memref<8x16xf32, #tpu.memory_space<vmem>>, vector<8x16xf32>
    tpu.vector_store %arg4[%c0_4, %c0_5], %3 {strides = array<i32>} : memref<8x16xf32, #tpu.memory_space<vmem>>, vector<8x16xf32>,
    %c1 = arith.constant 1 : index
    %c0_6 = arith.constant 0 : index
    %c0_7 = arith.constant 0 : index
    %5 = vector.load %arg2[%c1, %c0_6, %c0_7] : memref<3x32x16xf32, #tpu.memory_space<vmem>>, vector<1x32x16xf32>
    %6 = vector.shape_cast %5 : vector<1x32x16xf32> to vector<32x16xf32>
    %cst_8 = arith.constant dense<0.000000e+00> : vector<8x16xf32>
    %7 = tpu.matmul %0, %6, %cst_8 {dimension_numbers = #tpu.dot_dimension_numbers<[1], [0], [0], [1], [0, 0, 1, 1], [], []>} : vector<8x32xf32>, vector<32x16xf32>, vector<8x16xf32> -> vector<8x16xf32>
    %c0_9 = arith.constant 0 : index
    %c0_10 = arith.constant 0 : index
    %8 = vector.load %arg5[%c0_9, %c0_10] : memref<8x16xf32, #tpu.memory_space<vmem>>, vector<8x16xf32>
    tpu.vector_store %arg5[%c0_9, %c0_10], %7 {strides = array<i32>} : memref<8x16xf32, #tpu.memory_space<vmem>>, vector<8x16xf32>,
    %c2 = arith.constant 2 : index
    %c0_11 = arith.constant 0 : index
    %c0_12 = arith.constant 0 : index
    %9 = vector.load %arg2[%c2, %c0_11, %c0_12] : memref<3x32x16xf32, #tpu.memory_space<vmem>>, vector<1x32x16xf32>
    %10 = vector.shape_cast %9 : vector<1x32x16xf32> to vector<32x16xf32>
    %cst_13 = arith.constant dense<0.000000e+00> : vector<8x16xf32>
    %11 = tpu.matmul %0, %10, %cst_13 {dimension_numbers = #tpu.dot_dimension_numbers<[1], [0], [0], [1], [0, 0, 1, 1], [], []>} : vector<8x32xf32>, vector<32x16xf32>, vector<8x16xf32> -> vector<8x16xf32>
    %c0_14 = arith.constant 0 : index
    %c0_15 = arith.constant 0 : index
    %12 = vector.load %arg6[%c0_14, %c0_15] : memref<8x16xf32, #tpu.memory_space<vmem>>, vector<8x16xf32>
    tpu.vector_store %arg6[%c0_14, %c0_15], %11 {strides = array<i32>} : memref<8x16xf32, #tpu.memory_space<vmem>>, vector<8x16xf32>,
    %13 = tpu.iota {dimensions = array<i32: 0>} : vector<8x8xi32>
    %14 = tpu.iota {dimensions = array<i32: 1>} : vector<8x8xi32>
    %15 = arith.cmpi sle, %14, %13 : vector<8x8xi32>
    %c0_16 = arith.constant 0 : index
    %c0_17 = arith.constant 0 : index
    %16 = vector.load %arg4[%c0_16, %c0_17] : memref<8x16xf32, #tpu.memory_space<vmem>>, vector<8x16xf32>
    %c0_18 = arith.constant 0 : index
    %c0_19 = arith.constant 0 : index
    %17 = vector.load %arg5[%c0_18, %c0_19] : memref<8x16xf32, #tpu.memory_space<vmem>>, vector<8x16xf32>
    %c0_20 = arith.constant 0 : index
    %c0_21 = arith.constant 0 : index
    %18 = vector.load %arg6[%c0_20, %c0_21] : memref<8x16xf32, #tpu.memory_space<vmem>>, vector<8x16xf32>
    %cst_22 = arith.constant dense<0.000000e+00> : vector<8x8xf32>
    %19 = tpu.matmul %17, %16, %cst_22 {dimension_numbers = #tpu.dot_dimension_numbers<[1], [1], [0], [0], [0, 0, 1, 0], [], []>} : vector<8x16xf32>, vector<8x16xf32>, vector<8x8xf32> -> vector<8x8xf32>
    %cst_23 = arith.constant 0xFF800000 : f32
    %20 = vector.broadcast %cst_23 : f32 to vector<8x8xf32>
    %21 = arith.select %15, %19, %20 : vector<8x8xi1>, vector<8x8xf32>
    %cst_24 = arith.constant dense<0xFF800000> : vector<8xf32>
    %22 = vector.multi_reduction <maximumf>, %21, %cst_24 [1] : vector<8x8xf32> to vector<8xf32>
    %23 = vector.shape_cast %22 : vector<8xf32> to vector<8x1xf32>
    %24 = vector.broadcast %23 : vector<8x1xf32> to vector<8x8xf32>
    %25 = arith.subf %21, %24 : vector<8x8xf32>
    %26 = math.exp %25 : vector<8x8xf32>
    %cst_25 = arith.constant dense<0.000000e+00> : vector<8xf32>
    %27 = vector.multi_reduction <add>, %26, %cst_25 [1] : vector<8x8xf32> to vector<8xf32>
    %28 = vector.shape_cast %27 : vector<8xf32> to vector<8x1xf32>
    %cst_26 = arith.constant dense<0.000000e+00> : vector<8x16xf32>
    %29 = tpu.matmul %26, %18, %cst_26 {dimension_numbers = #tpu.dot_dimension_numbers<[1], [0], [0], [1], [0, 0, 1, 1], [], []>} : vector<8x8xf32>, vector<8x16xf32>, vector<8x16xf32> -> vector<8x16xf32>
    %30 = tpu.reciprocal %28 {approx = true} : vector<8x1xf32> -> vector<8x1xf32>
    %31 = arith.mulf %28, %30 : vector<8x1xf32>
    %cst_27 = arith.constant 2.000000e+00 : f32
    %32 = vector.broadcast %cst_27 : f32 to vector<8x1xf32>
    %33 = arith.subf %32, %31 : vector<8x1xf32>
    %34 = arith.mulf %30, %33 : vector<8x1xf32>
    %35 = vector.broadcast %34 : vector<8x1xf32> to vector<8x16xf32>
    %36 = arith.mulf %29, %35 : vector<8x16xf32>
    %c0_28 = arith.constant 0 : index
    %c0_29 = arith.constant 0 : index
    %37 = vector.load %arg3[%c0_28, %c0_29] : memref<8x16xf32, #tpu.memory_space<vmem>>, vector<8x16xf32>
    tpu.vector_store %arg3[%c0_28, %c0_29], %36 {strides = array<i32>} : memref<8x16xf32, #tpu.memory_space<vmem>>, vector<8x16xf32>,
    return
  }
  func.func @transform_0(%arg0: i32) -> (i32, i32) {
    %c0_i32 = arith.constant 0 : i32
    %c0_i32_0 = arith.constant 0 : i32
    return %arg0, %c0_i32 : i32, i32
  }
  func.func @transform_1(%arg0: i32) -> (i32, i32, i32) {
    %c0_i32 = arith.constant 0 : i32
    %c0_i32_0 = arith.constant 0 : i32
    %c0_i32_1 = arith.constant 0 : i32
    %c0_i32_2 = arith.constant 0 : i32
    return %c0_i32, %c0_i32_0, %c0_i32_1 : i32, i32, i32
  }
  func.func @transform_2(%arg0: i32) -> (i32, i32) {
    %c0_i32 = arith.constant 0 : i32
    %c0_i32_0 = arith.constant 0 : i32
    return %arg0, %c0_i32 : i32, i32
  }
}

module attributes {stable_mosaic.version = 11 : i64} {
  func.func @_attention_head_kernel(%arg0: i32, %arg1: memref<8x32xf32, #tpu.memory_space<vmem>>, %arg2: memref<3x32x16xf32, #tpu.memory_space<vmem>>, %arg3: memref<8x16xf32, #tpu.memory_space<vmem>>, %arg4: memref<8x16xf32, #tpu.memory_space<vmem>>, %arg5: memref<8x16xf32, #tpu.memory_space<vmem>>, %arg6: memref<8x16xf32, #tpu.memory_space<vmem>>) attributes {dimension_semantics = [#tpu.dimension_semantics<parallel>], iteration_bounds = array<i64: 2>, scalar_prefetch = 0 : i64, scratch_operands = 3 : i64, tpu.core_type = #tpu.core_type<tc>, window_params = [{transform_indices = @transform_0, window_bounds = array<i64: 8, 32>}, {pipeline_mode = #tpu.pipeline_mode<synchronous>, transform_indices = @transform_1, window_bounds = array<i64: 3, 32, 16>}, {transform_indices = @transform_2, window_bounds = array<i64: 8, 16>}]} {
    %c0 = arith.constant 0 : index
    %c0_0 = arith.constant 0 : index
    %0 = vector.load %arg1[%c0, %c0_0] : memref<8x32xf32, #tpu.memory_space<vmem>>, vector<8x32xf32>
    %c0_1 = arith.constant 0 : index
    %c0_2 = arith.constant 0 : index
    %c0_3 = arith.constant 0 : index
    %1 = vector.load %arg2[%c0_1, %c0_2, %c0_3] : memref<3x32x16xf32, #tpu.memory_space<vmem>>, vector<1x32x16xf32>
    %2 = vector.shape_cast %1 : vector<1x32x16xf32> to vector<32x16xf32>
    %cst = arith.constant dense<0.000000e+00> : vector<8x16xf32>
    %3 = tpu.matmul %0, %2, %cst {dimension_numbers = #tpu.dot_dimension_numbers<[1], [0], [0], [1], [0, 0, 1, 1], [], []>} : vector<8x32xf32>, vector<32x16xf32>, vector<8x16xf32> -> vector<8x16xf32>
    %c0_4 = arith.constant 0 : index
    %c0_5 = arith.constant 0 : index
    %4 = vector.load %arg4[%c0_4, %c0_5] : memref<8x16xf32, #tpu.memory_space<vmem>>, vector<8x16xf32>
    tpu.vector_store %arg4[%c0_4, %c0_5], %3 {strides = array<i32>} : memref<8x16xf32, #tpu.memory_space<vmem>>, vector<8x16xf32>,
    %c1 = arith.constant 1 : index
    %c0_6 = arith.constant 0 : index
    %c0_7 = arith.constant 0 : index
    %5 = vector.load %arg2[%c1, %c0_6, %c0_7] : memref<3x32x16xf32, #tpu.memory_space<vmem>>, vector<1x32x16xf32>
    %6 = vector.shape_cast %5 : vector<1x32x16xf32> to vector<32x16xf32>
    %cst_8 = arith.constant dense<0.000000e+00> : vector<8x16xf32>
    %7 = tpu.matmul %0, %6, %cst_8 {dimension_numbers = #tpu.dot_dimension_numbers<[1], [0], [0], [1], [0, 0, 1, 1], [], []>} : vector<8x32xf32>, vector<32x16xf32>, vector<8x16xf32> -> vector<8x16xf32>
    %c0_9 = arith.constant 0 : index
    %c0_10 = arith.constant 0 : index
    %8 = vector.load %arg5[%c0_9, %c0_10] : memref<8x16xf32, #tpu.memory_space<vmem>>, vector<8x16xf32>
    tpu.vector_store %arg5[%c0_9, %c0_10], %7 {strides = array<i32>} : memref<8x16xf32, #tpu.memory_space<vmem>>, vector<8x16xf32>,
    %c2 = arith.constant 2 : index
    %c0_11 = arith.constant 0 : index
    %c0_12 = arith.constant 0 : index
    %9 = vector.load %arg2[%c2, %c0_11, %c0_12] : memref<3x32x16xf32, #tpu.memory_space<vmem>>, vector<1x32x16xf32>
    %10 = vector.shape_cast %9 : vector<1x32x16xf32> to vector<32x16xf32>
    %cst_13 = arith.constant dense<0.000000e+00> : vector<8x16xf32>
    %11 = tpu.matmul %0, %10, %cst_13 {dimension_numbers = #tpu.dot_dimension_numbers<[1], [0], [0], [1], [0, 0, 1, 1], [], []>} : vector<8x32xf32>, vector<32x16xf32>, vector<8x16xf32> -> vector<8x16xf32>
    %c0_14 = arith.constant 0 : index
    %c0_15 = arith.constant 0 : index
    %12 = vector.load %arg6[%c0_14, %c0_15] : memref<8x16xf32, #tpu.memory_space<vmem>>, vector<8x16xf32>
    tpu.vector_store %arg6[%c0_14, %c0_15], %11 {strides = array<i32>} : memref<8x16xf32, #tpu.memory_space<vmem>>, vector<8x16xf32>,
    %13 = tpu.iota {dimensions = array<i32: 0>} : vector<8x8xi32>
    %14 = tpu.iota {dimensions = array<i32: 1>} : vector<8x8xi32>
    %15 = arith.cmpi sle, %14, %13 : vector<8x8xi32>
    %c0_16 = arith.constant 0 : index
    %c0_17 = arith.constant 0 : index
    %16 = vector.load %arg4[%c0_16, %c0_17] : memref<8x16xf32, #tpu.memory_space<vmem>>, vector<8x16xf32>
    %c0_18 = arith.constant 0 : index
    %c0_19 = arith.constant 0 : index
    %17 = vector.load %arg5[%c0_18, %c0_19] : memref<8x16xf32, #tpu.memory_space<vmem>>, vector<8x16xf32>
    %c0_20 = arith.constant 0 : index
    %c0_21 = arith.constant 0 : index
    %18 = vector.load %arg6[%c0_20, %c0_21] : memref<8x16xf32, #tpu.memory_space<vmem>>, vector<8x16xf32>
    %cst_22 = arith.constant dense<0.000000e+00> : vector<8x8xf32>
    %19 = tpu.matmul %17, %16, %cst_22 {dimension_numbers = #tpu.dot_dimension_numbers<[1], [1], [0], [0], [0, 0, 1, 0], [], []>} : vector<8x16xf32>, vector<8x16xf32>, vector<8x8xf32> -> vector<8x8xf32>
    %cst_23 = arith.constant 0xFF800000 : f32
    %20 = vector.broadcast %cst_23 : f32 to vector<8x8xf32>
    %21 = arith.select %15, %19, %20 : vector<8x8xi1>, vector<8x8xf32>
    %cst_24 = arith.constant dense<0xFF800000> : vector<8xf32>
    %22 = vector.multi_reduction <maximumf>, %21, %cst_24 [1] : vector<8x8xf32> to vector<8xf32>
    %23 = vector.shape_cast %22 : vector<8xf32> to vector<8x1xf32>
    %24 = vector.broadcast %23 : vector<8x1xf32> to vector<8x8xf32>
    %25 = arith.subf %21, %24 : vector<8x8xf32>
    %26 = math.exp %25 : vector<8x8xf32>
    %cst_25 = arith.constant dense<0.000000e+00> : vector<8xf32>
    %27 = vector.multi_reduction <add>, %26, %cst_25 [1] : vector<8x8xf32> to vector<8xf32>
    %28 = vector.shape_cast %27 : vector<8xf32> to vector<8x1xf32>
    %cst_26 = arith.constant dense<0.000000e+00> : vector<8x16xf32>
    %29 = tpu.matmul %26, %18, %cst_26 {dimension_numbers = #tpu.dot_dimension_numbers<[1], [0], [0], [1], [0, 0, 1, 1], [], []>} : vector<8x8xf32>, vector<8x16xf32>, vector<8x16xf32> -> vector<8x16xf32>
    %30 = tpu.reciprocal %28 {approx = true} : vector<8x1xf32> -> vector<8x1xf32>
    %31 = arith.mulf %28, %30 : vector<8x1xf32>
    %cst_27 = arith.constant 2.000000e+00 : f32
    %32 = vector.broadcast %cst_27 : f32 to vector<8x1xf32>
    %33 = arith.subf %32, %31 : vector<8x1xf32>
    %34 = arith.mulf %30, %33 : vector<8x1xf32>
    %35 = vector.broadcast %34 : vector<8x1xf32> to vector<8x16xf32>
    %36 = arith.mulf %29, %35 : vector<8x16xf32>
    %c0_28 = arith.constant 0 : index
    %c0_29 = arith.constant 0 : index
    %37 = vector.load %arg3[%c0_28, %c0_29] : memref<8x16xf32, #tpu.memory_space<vmem>>, vector<8x16xf32>
    tpu.vector_store %arg3[%c0_28, %c0_29], %36 {strides = array<i32>} : memref<8x16xf32, #tpu.memory_space<vmem>>, vector<8x16xf32>,
    return
  }
  func.func @transform_0(%arg0: i32) -> (i32, i32) {
    %c0_i32 = arith.constant 0 : i32
    %c0_i32_0 = arith.constant 0 : i32
    return %arg0, %c0_i32 : i32, i32
  }
  func.func @transform_1(%arg0: i32) -> (i32, i32, i32) {
    %c0_i32 = arith.constant 0 : i32
    %c0_i32_0 = arith.constant 0 : i32
    %c0_i32_1 = arith.constant 0 : i32
    %c0_i32_2 = arith.constant 0 : i32
    return %c0_i32, %c0_i32_0, %c0_i32_1 : i32, i32, i32
  }
  func.func @transform_2(%arg0: i32) -> (i32, i32) {
    %c0_i32 = arith.constant 0 : i32
    %c0_i32_0 = arith.constant 0 : i32
    return %arg0, %c0_i32 : i32, i32
  }
}

</mosaic_0001>

<bundles_post_ra>
// kernel: tpu_custom_call.1
= control target key start
LH: loop header
LB: loop body
LE: loop exit
PB: predicated region body
PF: predicated region fallthrough
CT: control target
= control target key end

     0   :  { %7 = vsyncpa [#allocation6], 0  ;;  %s644_s0 = inlined_call_operand.vmem [shape: f32[16,32], index: 0, kind: input, shape index: {}]   ;;  %s645_s1 = inlined_call_operand.vmem [shape: f32[3,32,16], index: 1, kind: input, shape index: {}]   ;;  %s646_s2 = inlined_call_operand.hbm [shape: f32[16,16], index: 2, kind: output, shape index: {}]  }
   0x1   :  { %9 = vsyncpa [#allocation6 + $0x1], 0  ;;  %s517_s9 = smov 0   ;;  %s519_s10 = smov 0  }
   0x2   :  { %s521_s11 = smov 0   ;;  %s523_s12 = smov 0  }
   0x3 LB: > { %s538_s13 = sadd.s32 4294967295, %s500_s12   ;;  %s371_s14 = sadd.s32 4294967294, %s500_s12   ;;  %s500_s12 = sphi %s523_s12, %s652_s12   ;;  %s496_s11 = sphi %s521_s11, %s651_s11   ;;  %s492_s10 = sphi %s519_s10, %s650_s10   ;;  %s488_s9 = sphi %s517_s9, %s649_s9  }
   0x4   : > { %s542_s15 = sadd.s32 1, %s500_s12   ;;  %s69_s16 = sadd.s32 1, %s496_s11 }
   0x5   : > { %s66_s17 = ssub.s32 %s500_s12, %s542_s15  ;;  %p79_p0 = scmp.ne.s32.totalorder %s496_s11, %s492_s10 }
   0x6   : > { %p67_p1 = scmp.eq.s32.totalorder %s66_s17, 0  ;;  %p80_p2 = scmp.eq.s32.totalorder %s538_s13, 1 }
   0x7   : > { %p85_p3 = scmp.ne.s32.totalorder %s492_s10, %s488_s9  ;;  %p86_p4 = scmp.eq.s32.totalorder %s371_s14, 1 }
   0x8   : > { %s553_s18 = scalar_select %p67_p1, %s496_s11, %s69_s16  }
   0x9   : > { %p555_p5 = por %p80_p2, %p79_p0  ;;  %p559_p6 = por %p86_p4, %p85_p3 }
   0xa   : > { %p374_p7 = scmp.ge.s32.totalorder %s500_s12, 1  ;;  %p114_p8 = scmp.lt.s32.totalorder %s500_s12, 3 }
   0xc   : > { %p115_p9 = pnand %p374_p7, %p114_p8 }
   0xd   : > { %p135_p10 = scmp.lt.s32.totalorder (!%p115_p9), %s538_s13, 1  ;;  %s392_s5 = sshll.u32 (!%p115_p9), %s538_s13, 3 }
   0xe   : > { %118 = sbr.rel (%p115_p9) target bundleno = 562 (0x232), region = 28  ;;  %s458_s25 = scalar_lea.hbm (!%p115_p9), %s646_s2, 16 }
  0x13   : > { %v143_v0 = vld [vmem:[%s645_s1 + $0x18] sm:$0xff]  ;;  %v142_v1 = vld [vmem:[%s645_s1 + $0x10] sm:$0xff]  ;;  %v141_v4 = vld [vmem:[%s645_s1 + $0x8] sm:$0xff]  ;;  %s136_s3 = scalar_select %p135_p10, %s538_s13, 1  ;;  %vm144_vm0 = vcmask 261120   ;;  %vm168_vm1 = vcmask 130048   ;;  %v222_v18 = vlaneseq }
  0x14   : > { %v381_v2 = vld [vmem:[%s645_s1 + $0x38] sm:$0xff]  ;;  %160 = vmatpush.msra.mxu0 %v143_v0  ;;  %v380_v3 = vld [vmem:[%s645_s1 + $0x30] sm:$0xff]  ;;  %v379_v5 = vld [vmem:[%s645_s1 + $0x28] sm:$0xff]  ;;  %vm257_vm3 = vcmask 64512  }
  0x15   : > { %187 = vmatpush.msra.mxu1 %v381_v2  ;;  %v140_v6 = vld [vmem:[%s645_s1] sm:$0xff]  ;;  %s376_s8 = sshll.u32 %s136_s3, 3  ;;  %v386_v9 = vld [vmem:[%s645_s1 + $0x58] sm:$0xff]  ;;  %v385_v10 = vld [vmem:[%s645_s1 + $0x50] sm:$0xff]  ;;  %v223_v19 = vshrl.u32 %v222_v18, 7  ;;  %v225_v20 = vand.u32 127, %v222_v18 }
  0x16   : > { %161 = vmatpush.msra.mxu0 %v142_v1  ;;  %v378_v7 = vld [vmem:[%s645_s1 + $0x20] sm:$0xff]  ;;  %s138_s22 = scalar_lea.vmem %s644_s0, %s376_s8  ;;  %213 = vmatpush.msra.mxu2 %v386_v9  ;;  %v384_v11 = vld [vmem:[%s645_s1 + $0x48] sm:$0xff]  ;;  %s132_s3 = sand.u32 1, %s492_s10  }
  0x17   : > { %188 = vmatpush.msra.mxu1 %v380_v3  ;;  %v139_v8 = vld [vmem:[%s138_s22] sm:$0xff]  ;;  %vm226_vm2 = vcmp.le.s32.totalorder %v225_v20, %v223_v19  ;;  %s375_s4 = sshll.u32 %s132_s3, 3  ;;  %s307_s8 = scalar_lea.hbm %s646_s2, %s392_s5 }
  0x18   : > { %162 = vmatpush.msra.mxu0 %v141_v4  ;;  %214 = vmatpush.msra.mxu2 %v385_v10  ;;  %v383_v12 = vld [vmem:[%s645_s1 + $0x40] sm:$0xff]  ;;  %s134_s14 = scalar_lea.vmem [#allocation5], %s375_s4  ;;  %s311_s17 = sshll.u32 %s307_s8, 4  ;;  %s312_s17 = int_to_ptr.hbm [resolvable:$true] %s311_s17 }
  0x19   : > { %189 = vmatpush.msra.mxu1 %v379_v5  ;;  %s309_s16 = sshll.u32 %s134_s14, 4  ;;  %s297_s21 = scalar_lea.sflag [#allocation6], %s132_s3  ;;  %s310_s16 = int_to_ptr.vmem [resolvable:$true] %s309_s16 }
  0x1a   : > { %163 = vmatpush.msra.mxu0 %v140_v6  ;;  %215 = vmatpush.msra.mxu2 %v384_v11  ;;  %s452_s22 = sshra.s32 %s312_s17, 4  ;;  %s453_s22 = int_to_ptr.hbm [resolvable:$true] %s452_s22 }
  0x1b   : > { %190 = vmatpush.msra.mxu1 %v378_v7  ;;  %377 = vmatmul.msk.f32.vlgmr.msra.gmra.mxu0 %vm144_vm0, %v139_v8  ;;  %s454_s13 = scalar_lea.hbm %s453_s22, 8  ;;  %p459_p0 = scmp.lt.s32.totalorder %s453_s22, %s646_s2 }
  0x1c   : > { %382 = vmatmul.msk.f32.vlgmr.msra.gmra.mxu1 %vm144_vm0, %v139_v8  ;;  %216 = vmatpush.msra.mxu2 %v383_v12  ;;  %p455_p11 = scmp.ne.s32.totalorder %s453_s22, %s454_s13  ;;  %p460_p1 = scmp.lt.s32.totalorder %s458_s25, %s454_s13 }
  0x1d   : > { %387 = vmatmul.msk.f32.vlgmr.msra.gmra.mxu2 %vm144_vm0, %v139_v8 }
  0x1e   : > { %p456_p12 = pnand %p455_p11, %p555_p5  ;;  %p461_p2 = por %p460_p1, %p459_p0 }
  0x20   : > { %p457_p13 = pneg %p456_p12 }
  0x22   : > { %p462_p3 = pnand %p461_p2, %p457_p13 }
  0x98   : > { %v165_v13 = vpop.f32.mrf.mxu0 }
  0x99   : > { %v192_v14 = vpop.f32.mrf.mxu1  ;;  %169 = vst.msk [vmem:[#allocation2] sm:$0xff] %vm168_vm1, %v165_v13 }
  0x9a   : > { %195 = vst.msk [vmem:[#allocation3] sm:$0xff] %vm168_vm1, %v192_v14 }
  0xa0   : > { %v227_v15 = vld [vmem:[#allocation2] sm:$0xff]  ;;  %v218_v17 = vpop.f32.mrf.mxu2 }
  0xa1   : > { %388 = vmatpush.xpose.msk.msra.mxu3 %vm168_vm1, %v227_v15  ;;  %v228_v16 = vld [vmem:[#allocation3] sm:$0xff]  ;;  %221 = vst.msk [vmem:[#allocation4] sm:$0xff] %vm168_vm1, %v218_v17 }
  0xa4   : > { %389 = vmatmul.msk.f32.vlgmr.msra.gmra.mxu3 %vm168_vm1, %v228_v16 }
  0xa8   : > { %v229_v24 = vld [vmem:[#allocation4] sm:$0xff] }
  0xa9   : > { %285 = vmatpush.msrb.mxu3 %v229_v24 }
 0x127   : > { %v253_v21 = vpop.f32.mrf.mxu3 }
 0x128   : > { %v256_v22 = vsel %vm226_vm2, %v253_v21, -inf }
 0x129   : > { %v258_v23 = vsel %vm257_vm3, %v256_v22, -inf }
 0x12a   : > { %259 = vmax.xlane.f32.xlu0 %v258_v23 }
 0x19d   : > { %v260_v25 = vpop.xlane.xlu0 %259 }
 0x19e   : > { %v261_v26 = vsub.f32 %v256_v22, %v260_v25 }
 0x1a0   : > { %v262_v27 = vmul.f32 1.442695, %v261_v26 }
 0x1a2   : > { %434 = vpow2.f32 %v262_v27 }
 0x1a8   : > { %v435_v28 = vpop.eup %434 }
 0x1a9   : > { %390 = vmatmul.msk.f32.vlgmr.msrb.gmra.mxu3 %vm257_vm3, %v435_v28  ;;  %v264_v29 = vsel %vm257_vm3, %v435_v28, 0.0 }
 0x1aa   : > { %265 = vadd.xlane.f32.xlu0 %v264_v29 }
 0x21d   : > { %v266_v30 = vpop.xlane.xlu0 %265 }
 0x21e   : > { %436 = vrcp.f32 %v266_v30 }
 0x224   : > { %v437_v31 = vpop.eup %436 }
 0x225   : > { %v291_v32 = vmul.f32 %v437_v31, %v266_v30 }
 0x227   : > { %v292_v33 = vsub.f32 2.0, %v291_v32 }
 0x229   : > { %v293_v34 = vmul.f32 %v437_v31, %v292_v33 }
 0x22c   : > { %v287_v35 = vpop.f32.mrf.mxu3 }
 0x22d   : > { %v294_v36 = vmul.f32 %v293_v34, %v287_v35 }
 0x22f   : > { %295 = vst.msk [vmem:[%s134_s14] sm:$0xff] %vm168_vm1, %v294_v36 }
 0x230   : > { %465 = shalt.err (!%p462_p3)
}
 0x231   : > { %395 = dma.vmem_to_hbm [thread:$0]  (%p555_p5), %s310_s16, 128, %s312_s17, %s297_s21  }
 0x232 PF: > { %p401_p4 = scmp.ge.s32.totalorder %s500_s12, 2  ;;  %s323_s28 = sand.u32 1, %s488_s9  }
 0x233   : > { %s324_s29 = scalar_lea.sflag [#allocation6], %s323_s28 }
 0x234   : > { %p398_p7 = pnand %p401_p4, %p559_p6 }
 0x236   : > { %p399_p8 = pneg %p398_p7 }
 0x238   : > { %483 = dma.done.wait (%p399_p8), %s324_s29, 128  }
 0x239   : > { %485 = vsyncadd (%p399_p8), %s324_s29, 4294967168  ;;  %p12_p9 = scmp.ge.s32.totalorder %s542_s15, 4   ;;  %s649_s9 = smov %s492_s10 }
 0x23a   : > { %s650_s10 = smov %s496_s11  ;;  %s651_s11 = smov %s553_s18 }
 0x23b   : > { %s652_s12 = smov %s542_s15  ;;  %14 = sbr.rel (!%p12_p9) target bundleno = 3 (0x3), region = 65 }
 0x240   :  { %330 = vsyncpa [#allocation6], 1 }
 0x241   :  { %332 = vsyncpa [#allocation6 + $0x1], 1 }

// kernel: tpu_custom_call.1
= control target key start
LH: loop header
LB: loop body
LE: loop exit
PB: predicated region body
PF: predicated region fallthrough
CT: control target
= control target key end

     0   :  { %7 = vsyncpa [#allocation6], 0  ;;  %s644_s0 = inlined_call_operand.vmem [shape: f32[16,32], index: 0, kind: input, shape index: {}]   ;;  %s645_s1 = inlined_call_operand.vmem [shape: f32[3,32,16], index: 1, kind: input, shape index: {}]   ;;  %s646_s2 = inlined_call_operand.hbm [shape: f32[16,16], index: 2, kind: output, shape index: {}]  }
   0x1   :  { %9 = vsyncpa [#allocation6 + $0x1], 0  ;;  %s517_s9 = smov 0   ;;  %s519_s10 = smov 0  }
   0x2   :  { %s521_s11 = smov 0   ;;  %s523_s12 = smov 0  }
   0x3 LB: > { %s538_s13 = sadd.s32 4294967295, %s500_s12   ;;  %s371_s14 = sadd.s32 4294967294, %s500_s12   ;;  %s500_s12 = sphi %s523_s12, %s652_s12   ;;  %s496_s11 = sphi %s521_s11, %s651_s11   ;;  %s492_s10 = sphi %s519_s10, %s650_s10   ;;  %s488_s9 = sphi %s517_s9, %s649_s9  }
   0x4   : > { %s542_s15 = sadd.s32 1, %s500_s12   ;;  %s69_s16 = sadd.s32 1, %s496_s11 }
   0x5   : > { %s66_s17 = ssub.s32 %s500_s12, %s542_s15  ;;  %p79_p0 = scmp.ne.s32.totalorder %s496_s11, %s492_s10 }
   0x6   : > { %p67_p1 = scmp.eq.s32.totalorder %s66_s17, 0  ;;  %p80_p2 = scmp.eq.s32.totalorder %s538_s13, 1 }
   0x7   : > { %p85_p3 = scmp.ne.s32.totalorder %s492_s10, %s488_s9  ;;  %p86_p4 = scmp.eq.s32.totalorder %s371_s14, 1 }
   0x8   : > { %s553_s18 = scalar_select %p67_p1, %s496_s11, %s69_s16  }
   0x9   : > { %p555_p5 = por %p80_p2, %p79_p0  ;;  %p559_p6 = por %p86_p4, %p85_p3 }
   0xa   : > { %p374_p7 = scmp.ge.s32.totalorder %s500_s12, 1  ;;  %p114_p8 = scmp.lt.s32.totalorder %s500_s12, 3 }
   0xc   : > { %p115_p9 = pnand %p374_p7, %p114_p8 }
   0xd   : > { %p135_p10 = scmp.lt.s32.totalorder (!%p115_p9), %s538_s13, 1  ;;  %s392_s5 = sshll.u32 (!%p115_p9), %s538_s13, 3 }
   0xe   : > { %118 = sbr.rel (%p115_p9) target bundleno = 562 (0x232), region = 28  ;;  %s458_s25 = scalar_lea.hbm (!%p115_p9), %s646_s2, 16 }
  0x13   : > { %v143_v0 = vld [vmem:[%s645_s1 + $0x18] sm:$0xff]  ;;  %v142_v1 = vld [vmem:[%s645_s1 + $0x10] sm:$0xff]  ;;  %v141_v4 = vld [vmem:[%s645_s1 + $0x8] sm:$0xff]  ;;  %s136_s3 = scalar_select %p135_p10, %s538_s13, 1  ;;  %vm144_vm0 = vcmask 261120   ;;  %vm168_vm1 = vcmask 130048   ;;  %v222_v18 = vlaneseq }
  0x14   : > { %v381_v2 = vld [vmem:[%s645_s1 + $0x38] sm:$0xff]  ;;  %160 = vmatpush.msra.mxu0 %v143_v0  ;;  %v380_v3 = vld [vmem:[%s645_s1 + $0x30] sm:$0xff]  ;;  %v379_v5 = vld [vmem:[%s645_s1 + $0x28] sm:$0xff]  ;;  %vm257_vm3 = vcmask 64512  }
  0x15   : > { %187 = vmatpush.msra.mxu1 %v381_v2  ;;  %v140_v6 = vld [vmem:[%s645_s1] sm:$0xff]  ;;  %s376_s8 = sshll.u32 %s136_s3, 3  ;;  %v386_v9 = vld [vmem:[%s645_s1 + $0x58] sm:$0xff]  ;;  %v385_v10 = vld [vmem:[%s645_s1 + $0x50] sm:$0xff]  ;;  %v223_v19 = vshrl.u32 %v222_v18, 7  ;;  %v225_v20 = vand.u32 127, %v222_v18 }
  0x16   : > { %161 = vmatpush.msra.mxu0 %v142_v1  ;;  %v378_v7 = vld [vmem:[%s645_s1 + $0x20] sm:$0xff]  ;;  %s138_s22 = scalar_lea.vmem %s644_s0, %s376_s8  ;;  %213 = vmatpush.msra.mxu2 %v386_v9  ;;  %v384_v11 = vld [vmem:[%s645_s1 + $0x48] sm:$0xff]  ;;  %s132_s3 = sand.u32 1, %s492_s10  }
  0x17   : > { %188 = vmatpush.msra.mxu1 %v380_v3  ;;  %v139_v8 = vld [vmem:[%s138_s22] sm:$0xff]  ;;  %vm226_vm2 = vcmp.le.s32.totalorder %v225_v20, %v223_v19  ;;  %s375_s4 = sshll.u32 %s132_s3, 3  ;;  %s307_s8 = scalar_lea.hbm %s646_s2, %s392_s5 }
  0x18   : > { %162 = vmatpush.msra.mxu0 %v141_v4  ;;  %214 = vmatpush.msra.mxu2 %v385_v10  ;;  %v383_v12 = vld [vmem:[%s645_s1 + $0x40] sm:$0xff]  ;;  %s134_s14 = scalar_lea.vmem [#allocation5], %s375_s4  ;;  %s311_s17 = sshll.u32 %s307_s8, 4  ;;  %s312_s17 = int_to_ptr.hbm [resolvable:$true] %s311_s17 }
  0x19   : > { %189 = vmatpush.msra.mxu1 %v379_v5  ;;  %s309_s16 = sshll.u32 %s134_s14, 4  ;;  %s297_s21 = scalar_lea.sflag [#allocation6], %s132_s3  ;;  %s310_s16 = int_to_ptr.vmem [resolvable:$true] %s309_s16 }
  0x1a   : > { %163 = vmatpush.msra.mxu0 %v140_v6  ;;  %215 = vmatpush.msra.mxu2 %v384_v11  ;;  %s452_s22 = sshra.s32 %s312_s17, 4  ;;  %s453_s22 = int_to_ptr.hbm [resolvable:$true] %s452_s22 }
  0x1b   : > { %190 = vmatpush.msra.mxu1 %v378_v7  ;;  %377 = vmatmul.msk.f32.vlgmr.msra.gmra.mxu0 %vm144_vm0, %v139_v8  ;;  %s454_s13 = scalar_lea.hbm %s453_s22, 8  ;;  %p459_p0 = scmp.lt.s32.totalorder %s453_s22, %s646_s2 }
  0x1c   : > { %382 = vmatmul.msk.f32.vlgmr.msra.gmra.mxu1 %vm144_vm0, %v139_v8  ;;  %216 = vmatpush.msra.mxu2 %v383_v12  ;;  %p455_p11 = scmp.ne.s32.totalorder %s453_s22, %s454_s13  ;;  %p460_p1 = scmp.lt.s32.totalorder %s458_s25, %s454_s13 }
  0x1d   : > { %387 = vmatmul.msk.f32.vlgmr.msra.gmra.mxu2 %vm144_vm0, %v139_v8 }
  0x1e   : > { %p456_p12 = pnand %p455_p11, %p555_p5  ;;  %p461_p2 = por %p460_p1, %p459_p0 }
  0x20   : > { %p457_p13 = pneg %p456_p12 }
  0x22   : > { %p462_p3 = pnand %p461_p2, %p457_p13 }
  0x98   : > { %v165_v13 = vpop.f32.mrf.mxu0 }
  0x99   : > { %v192_v14 = vpop.f32.mrf.mxu1  ;;  %169 = vst.msk [vmem:[#allocation2] sm:$0xff] %vm168_vm1, %v165_v13 }
  0x9a   : > { %195 = vst.msk [vmem:[#allocation3] sm:$0xff] %vm168_vm1, %v192_v14 }
  0xa0   : > { %v227_v15 = vld [vmem:[#allocation2] sm:$0xff]  ;;  %v218_v17 = vpop.f32.mrf.mxu2 }
  0xa1   : > { %388 = vmatpush.xpose.msk.msra.mxu3 %vm168_vm1, %v227_v15  ;;  %v228_v16 = vld [vmem:[#allocation3] sm:$0xff]  ;;  %221 = vst.msk [vmem:[#allocation4] sm:$0xff] %vm168_vm1, %v218_v17 }
  0xa4   : > { %389 = vmatmul.msk.f32.vlgmr.msra.gmra.mxu3 %vm168_vm1, %v228_v16 }
  0xa8   : > { %v229_v24 = vld [vmem:[#allocation4] sm:$0xff] }
  0xa9   : > { %285 = vmatpush.msrb.mxu3 %v229_v24 }
 0x127   : > { %v253_v21 = vpop.f32.mrf.mxu3 }
 0x128   : > { %v256_v22 = vsel %vm226_vm2, %v253_v21, -inf }
 0x129   : > { %v258_v23 = vsel %vm257_vm3, %v256_v22, -inf }
 0x12a   : > { %259 = vmax.xlane.f32.xlu0 %v258_v23 }
 0x19d   : > { %v260_v25 = vpop.xlane.xlu0 %259 }
 0x19e   : > { %v261_v26 = vsub.f32 %v256_v22, %v260_v25 }
 0x1a0   : > { %v262_v27 = vmul.f32 1.442695, %v261_v26 }
 0x1a2   : > { %434 = vpow2.f32 %v262_v27 }
 0x1a8   : > { %v435_v28 = vpop.eup %434 }
 0x1a9   : > { %390 = vmatmul.msk.f32.vlgmr.msrb.gmra.mxu3 %vm257_vm3, %v435_v28  ;;  %v264_v29 = vsel %vm257_vm3, %v435_v28, 0.0 }
 0x1aa   : > { %265 = vadd.xlane.f32.xlu0 %v264_v29 }
 0x21d   : > { %v266_v30 = vpop.xlane.xlu0 %265 }
 0x21e   : > { %436 = vrcp.f32 %v266_v30 }
 0x224   : > { %v437_v31 = vpop.eup %436 }
 0x225   : > { %v291_v32 = vmul.f32 %v437_v31, %v266_v30 }
 0x227   : > { %v292_v33 = vsub.f32 2.0, %v291_v32 }
 0x229   : > { %v293_v34 = vmul.f32 %v437_v31, %v292_v33 }
 0x22c   : > { %v287_v35 = vpop.f32.mrf.mxu3 }
 0x22d   : > { %v294_v36 = vmul.f32 %v293_v34, %v287_v35 }
 0x22f   : > { %295 = vst.msk [vmem:[%s134_s14] sm:$0xff] %vm168_vm1, %v294_v36 }
 0x230   : > { %465 = shalt.err (!%p462_p3)
}
 0x231   : > { %395 = dma.vmem_to_hbm [thread:$0]  (%p555_p5), %s310_s16, 128, %s312_s17, %s297_s21  }
 0x232 PF: > { %p401_p4 = scmp.ge.s32.totalorder %s500_s12, 2  ;;  %s323_s28 = sand.u32 1, %s488_s9  }
 0x233   : > { %s324_s29 = scalar_lea.sflag [#allocation6], %s323_s28 }
 0x234   : > { %p398_p7 = pnand %p401_p4, %p559_p6 }
 0x236   : > { %p399_p8 = pneg %p398_p7 }
 0x238   : > { %483 = dma.done.wait (%p399_p8), %s324_s29, 128  }
 0x239   : > { %485 = vsyncadd (%p399_p8), %s324_s29, 4294967168  ;;  %p12_p9 = scmp.ge.s32.totalorder %s542_s15, 4   ;;  %s649_s9 = smov %s492_s10 }
 0x23a   : > { %s650_s10 = smov %s496_s11  ;;  %s651_s11 = smov %s553_s18 }
 0x23b   : > { %s652_s12 = smov %s542_s15  ;;  %14 = sbr.rel (!%p12_p9) target bundleno = 3 (0x3), region = 65 }
 0x240   :  { %330 = vsyncpa [#allocation6], 1 }
 0x241   :  { %332 = vsyncpa [#allocation6 + $0x1], 1 }

</bundles_post_ra>
